<compile_context>
chip_gen: v5e
topology: v5e:2x2
jax: 0.10.0
libtpu: 0.0.40
codegen_flags: <defaults>
</compile_context>

<pallas_src>
import functools

import numpy as np
import jax
import jax.numpy as jnp
from jax.experimental import pallas as pl
from jax.experimental.pallas import tpu as pltpu

LANES = 128            # vreg lane width
MAX_LANE_TILE = 65536  # columns (tets / edges) per grid step, multiple of 128
MAX_ROW_TILE = 4096    # rows per grid step for the flattened elementwise kernel

_PARALLEL = pltpu.CompilerParams(dimension_semantics=("parallel",))

# ---------------------------------------------------------------------------
# DMTet lookup tables (same values as the PyTorch module, int32)
# ---------------------------------------------------------------------------
TRIANGLE_TABLE = jnp.array(
    [[-1, -1, -1, -1, -1, -1], [1, 0, 2, -1, -1, -1], [4, 0, 3, -1, -1, -1],
     [1, 4, 2, 1, 3, 4], [3, 1, 5, -1, -1, -1], [2, 3, 0, 2, 5, 3],
     [1, 4, 0, 1, 5, 4], [4, 2, 5, -1, -1, -1], [4, 5, 2, -1, -1, -1],
     [4, 1, 0, 4, 5, 1], [3, 2, 0, 3, 5, 2], [1, 3, 5, -1, -1, -1],
     [4, 1, 2, 4, 3, 1], [3, 0, 4, -1, -1, -1], [2, 0, 1, -1, -1, -1],
     [-1, -1, -1, -1, -1, -1]], dtype=jnp.int32)

NUM_TRIANGLES_TABLE = jnp.array(
    [0, 1, 1, 2, 1, 2, 2, 1, 1, 2, 2, 1, 2, 1, 1, 0], dtype=jnp.int32)

BASE_TET_EDGES = jnp.array([0, 1, 0, 2, 0, 3, 1, 2, 1, 3, 2, 3], dtype=jnp.int32)


# ---------------------------------------------------------------------------
# tiling helpers
# ---------------------------------------------------------------------------
def _round_up(n, m):
    return ((n + m - 1) // m) * m


def _lane_tile(n):
    """Lane tile for n columns: multiple of 128, capped, and (when possible)
    small enough that the grid has >= 2 steps so a v7x megacore can shard the
    single 'parallel' axis across both TensorCores."""
    npad = _round_up(max(n, 1), LANES)
    half = _round_up(-(-npad // 2), LANES)
    return min(MAX_LANE_TILE, max(half, LANES))


# ---------------------------------------------------------------------------
# Kernel 1: vertex deformation   v + scale * tanh(d)    (lane-dense, flattened)
# ---------------------------------------------------------------------------
def _deform_kernel(scale, v_ref, d_ref, o_ref):
    o_ref[...] = v_ref[...] + scale * jnp.tanh(d_ref[...])


@functools.partial(jax.jit, static_argnums=(2,))
def _deform_impl(verts, deform, scale):
    n, c = verts.shape
    total = n * c
    flat_v = verts.reshape(-1)
    flat_d = deform.reshape(-1)

    padded = _round_up(total, 8 * LANES)          # pad only to a full (8,128) tile
    pad = padded - total
    if pad:
        flat_v = jnp.pad(flat_v, (0, pad))
        flat_d = jnp.pad(flat_d, (0, pad))
    rows = padded // LANES                        # multiple of 8

    # prefer >= 2 grid steps (v7x megacore) while capping per-block VMEM
    half_rows = _round_up(-(-rows // 2), 8)
    block_rows = min(MAX_ROW_TILE, max(half_rows, 8))
    grid = pl.cdiv(rows, block_rows)              # ragged tail block is masked

    v2 = flat_v.reshape(rows, LANES)
    d2 = flat_d.reshape(rows, LANES)

    out = pl.pallas_call(
        functools.partial(_deform_kernel, scale),
        out_shape=jax.ShapeDtypeStruct((rows, LANES), jnp.float32),
        grid=(grid,),
        in_specs=[pl.BlockSpec((block_rows, LANES), lambda i: (i, 0)),
                  pl.BlockSpec((block_rows, LANES), lambda i: (i, 0))],
        out_specs=pl.BlockSpec((block_rows, LANES), lambda i: (i, 0)),
        compiler_params=_PARALLEL,
    )(v2, d2)
    return out.reshape(-1)[:total].reshape(n, c)


def deform_verts(verts, deform, scale):
    return _deform_impl(verts.astype(jnp.float32), deform.astype(jnp.float32),
                        float(scale))


# ---------------------------------------------------------------------------
# Kernel 2: per-tet occupancy code  (transposed [4, F] int8, tets on lanes)
#   tetindex = sum(occ_i * 2^i); validity derived outside as 0 < idx < 15
# ---------------------------------------------------------------------------
def _occ_kernel(occ_ref, idx_ref):
    occ = occ_ref[...].astype(jnp.int32)                       # widen i8 -> i32
    idx_ref[...] = (occ[0:1, :] + 2 * occ[1:2, :]
                    + 4 * occ[2:3, :] + 8 * occ[3:4, :])


def tet_occupancy(occ_4f):
    """occ_4f: (4, F) int8 occupancy (transposed). Returns tetindex (F,) int32."""
    f = occ_4f.shape[1]
    tile = _lane_tile(f)
    out = pl.pallas_call(
        _occ_kernel,
        out_shape=jax.ShapeDtypeStruct((1, f), jnp.int32),
        grid=(pl.cdiv(f, tile),),
        in_specs=[pl.BlockSpec((4, tile), lambda i: (0, i))],
        out_specs=pl.BlockSpec((1, tile), lambda i: (0, i)),
        compiler_params=_PARALLEL,
    )(occ_4f)
    return out[0]


# ---------------------------------------------------------------------------
# Kernel 3: edge zero-crossing interpolation (transposed [features, M])
#   w0 = -s1 / (s0 - s1); w1 = s0 / (s0 - s1); v = p0*w0 + p1*w1
#   Four aligned whole-ref operands (no sublane-offset slices in the kernel).
# ---------------------------------------------------------------------------
def _interp_kernel(p0_ref, p1_ref, s0_ref, s1_ref, out_ref):
    s0 = s0_ref[...]
    s1 = s1_ref[...]
    inv = pl.reciprocal(s0 - s1, approx=True)   # EUP slot, co-issues with VALU
    out_ref[...] = p0_ref[...] * (-s1 * inv) + p1_ref[...] * (s0 * inv)


def interp_edge_verts(p0, p1, s0, s1):
    """p0, p1: (3, M) f32 endpoint positions; s0, s1: (1, M) f32 SDF values.
    Returns interpolated vertices (M, 3)."""
    m = p0.shape[1]
    if m == 0:
        return jnp.zeros((0, 3), jnp.float32)
    tile = _lane_tile(m)
    out = pl.pallas_call(
        _interp_kernel,
        out_shape=jax.ShapeDtypeStruct((3, m), jnp.float32),
        grid=(pl.cdiv(m, tile),),
        in_specs=[pl.BlockSpec((3, tile), lambda i: (0, i)),
                  pl.BlockSpec((3, tile), lambda i: (0, i)),
                  pl.BlockSpec((1, tile), lambda i: (0, i)),
                  pl.BlockSpec((1, tile), lambda i: (0, i))],
        out_specs=pl.BlockSpec((3, tile), lambda i: (0, i)),
        compiler_params=_PARALLEL,
    )(p0, p1, s0, s1)
    return out.T


# ---------------------------------------------------------------------------
# Marching tetrahedra (DMTet.__call__) — Pallas for dense math, eager JAX glue
# for the dynamic-shape index bookkeeping (torch.unique / boolean compaction).
# ---------------------------------------------------------------------------
def marching_tets(pos_nx3, sdf_n, tet_fx4):
    pos_nx3 = pos_nx3.astype(jnp.float32)
    sdf_n = sdf_n.astype(jnp.float32)
    occ_n = sdf_n > 0

    # per-tet occupancy code (gather already in the transposed (4, F) layout)
    occ_4f = occ_n[tet_fx4.T].astype(jnp.int8)                # (4, F) int8
    tetindex = tet_occupancy(occ_4f)                          # (F,) int32
    valid_tets = jnp.logical_and(tetindex > 0, tetindex < 15)

    tets_valid = tet_fx4[valid_tets]
    tetindex_valid = tetindex[valid_tets]

    # edges of valid tets, sorted so (min, max)
    all_edges = tets_valid[:, BASE_TET_EDGES].reshape(-1, 2)
    a = jnp.minimum(all_edges[:, 0], all_edges[:, 1])
    b = jnp.maximum(all_edges[:, 0], all_edges[:, 1])
    all_edges_sorted = jnp.stack([a, b], axis=-1)

    # unique edges + inverse map (dynamic shape -> eager JAX, not a kernel)
    unique_edges, idx_map = jnp.unique(all_edges_sorted, axis=0, return_inverse=True)
    idx_map = idx_map.ravel()

    edge_occ = occ_n[unique_edges].sum(-1)
    mask_edges = edge_occ == 1
    mapping = jnp.where(mask_edges, jnp.cumsum(mask_edges.astype(jnp.int32)) - 1, -1)
    idx_map = mapping[idx_map]
    interp_v = unique_edges[mask_edges]                       # (M, 2)

    # per-endpoint gathers directly into the (features, M) layout the kernel wants
    pos_t = pos_nx3.T                                         # (3, N)
    p0 = pos_t[:, interp_v[:, 0]]                             # (3, M)
    p1 = pos_t[:, interp_v[:, 1]]                             # (3, M)
    s0 = sdf_n[interp_v[:, 0]][None, :]                       # (1, M)
    s1 = sdf_n[interp_v[:, 1]][None, :]                       # (1, M)
    verts = interp_edge_verts(p0, p1, s0, s1)                 # (M, 3)

    # face assembly from triangle lookup table
    idx_map = idx_map.reshape(-1, 6)
    num_triangles = NUM_TRIANGLES_TABLE[tetindex_valid]
    m1 = num_triangles == 1
    m2 = num_triangles == 2
    faces1 = jnp.take_along_axis(
        idx_map[m1], TRIANGLE_TABLE[tetindex_valid[m1]][:, :3], axis=1).reshape(-1, 3)
    faces2 = jnp.take_along_axis(
        idx_map[m2], TRIANGLE_TABLE[tetindex_valid[m2]][:, :6], axis=1).reshape(-1, 3)
    faces = jnp.concatenate([faces1, faces2], axis=0)
    return verts, faces


# ---------------------------------------------------------------------------
# DMTetGeometry equivalent
# ---------------------------------------------------------------------------
class DMTetGeometryJAX:
    def __init__(self, grid_res, scale, verts_np, indices_np, key):
        self.grid_res = grid_res
        self.verts = jnp.asarray(verts_np, jnp.float32) * scale
        self.indices = jnp.asarray(indices_np, jnp.int32)
        # deterministic parameter init (matches torch defaults: rand-0.1, zeros)
        self.sdf = jax.random.uniform(key, (self.verts.shape[0],), jnp.float32) - 0.1
        self.deform = jnp.zeros_like(self.verts)

    def get_mesh(self):
        v_deformed = deform_verts(self.verts, self.deform, 2.0 / (self.grid_res * 2))
        verts, faces = marching_tets(v_deformed, self.sdf, self.indices)
        return verts, faces

    def forward(self, render_fn):
        verts, faces = self.get_mesh()
        # TODO(synk): mesh.Mesh carries material/uv attributes; only geometry here.
        return render_fn(verts, faces)


# ---------------------------------------------------------------------------
# deterministic synthetic tet grid (replaces data/tets/<res>_tets.npz)
# ---------------------------------------------------------------------------
def make_tet_grid(res):
    n = res + 1
    lin = np.linspace(-0.5, 0.5, n, dtype=np.float32)
    gx, gy, gz = np.meshgrid(lin, lin, lin, indexing="ij")
    verts = np.stack([gx, gy, gz], axis=-1).reshape(-1, 3)

    def vid(x, y, z):
        return (x * n + y) * n + z

    cube_tets = [(0, 1, 3, 7), (0, 3, 2, 7), (0, 2, 6, 7),
                 (0, 6, 4, 7), (0, 4, 5, 7), (0, 5, 1, 7)]
    tets = []
    for x in range(res):
        for y in range(res):
            for z in range(res):
                c = [vid(x + dx, y + dy, z + dz)
                     for dx in (0, 1) for dy in (0, 1) for dz in (0, 1)]
                for t in cube_tets:
                    tets.append([c[i] for i in t])
    return verts, np.array(tets, dtype=np.int32)


if __name__ == "__main__":
    grid_res = 4
    scale = 2.0
    verts_np, indices_np = make_tet_grid(grid_res)   # 125 verts, 384 tets

    key = jax.random.PRNGKey(0)
    geom = DMTetGeometryJAX(grid_res, scale, verts_np, indices_np, key)

    # trivial render_fn: identity on geometry
    out_verts, out_faces = geom.forward(lambda v, f: (v, f))
    jax.block_until_ready(out_verts)
    jax.block_until_ready(out_faces)

    assert out_verts.shape[-1] == 3 and out_faces.shape[-1] == 3
    print("KERNEL_OK")
</pallas_src>

<mosaic_0001>
module attributes {stable_mosaic.version = 11 : i64} {
  func.func @_deform_kernel(%arg0: i32, %arg1: memref<8x128xf32, #tpu.memory_space<vmem>>, %arg2: memref<8x128xf32, #tpu.memory_space<vmem>>, %arg3: memref<8x128xf32, #tpu.memory_space<vmem>>) attributes {dimension_semantics = [#tpu.dimension_semantics<parallel>], iteration_bounds = array<i64: 1>, scalar_prefetch = 0 : i64, scratch_operands = 0 : i64, tpu.core_type = #tpu.core_type<tc>, window_params = [{transform_indices = @transform_0, window_bounds = array<i64: 8, 128>}, {transform_indices = @transform_1, window_bounds = array<i64: 8, 128>}, {transform_indices = @transform_2, window_bounds = array<i64: 8, 128>}]} {
    %c0 = arith.constant 0 : index
    %c0_0 = arith.constant 0 : index
    %0 = vector.load %arg1[%c0, %c0_0] : memref<8x128xf32, #tpu.memory_space<vmem>>, vector<8x128xf32>
    %c0_1 = arith.constant 0 : index
    %c0_2 = arith.constant 0 : index
    %1 = vector.load %arg2[%c0_1, %c0_2] : memref<8x128xf32, #tpu.memory_space<vmem>>, vector<8x128xf32>
    %2 = math.tanh %1 : vector<8x128xf32>
    %cst = arith.constant 2.500000e-01 : f32
    %3 = vector.broadcast %cst : f32 to vector<8x128xf32>
    %4 = arith.mulf %3, %2 : vector<8x128xf32>
    %5 = arith.addf %0, %4 : vector<8x128xf32>
    %c0_3 = arith.constant 0 : index
    %c0_4 = arith.constant 0 : index
    %6 = vector.load %arg3[%c0_3, %c0_4] : memref<8x128xf32, #tpu.memory_space<vmem>>, vector<8x128xf32>
    tpu.vector_store %arg3[%c0_3, %c0_4], %5 {strides = array<i32>} : memref<8x128xf32, #tpu.memory_space<vmem>>, vector<8x128xf32>,
    return
  }
  func.func @transform_0(%arg0: i32) -> (i32, i32) {
    %c0_i32 = arith.constant 0 : i32
    %c0_i32_0 = arith.constant 0 : i32
    return %arg0, %c0_i32 : i32, i32
  }
  func.func @transform_1(%arg0: i32) -> (i32, i32) {
    %c0_i32 = arith.constant 0 : i32
    %c0_i32_0 = arith.constant 0 : i32
    return %arg0, %c0_i32 : i32, i32
  }
  func.func @transform_2(%arg0: i32) -> (i32, i32) {
    %c0_i32 = arith.constant 0 : i32
    %c0_i32_0 = arith.constant 0 : i32
    return %arg0, %c0_i32 : i32, i32
  }
}

</mosaic_0001>

<bundles_post_ra>
// kernel: _deform_impl.1
= control target key start
LH: loop header
LB: loop body
LE: loop exit
PB: predicated region body
PF: predicated region fallthrough
CT: control target
= control target key end

     0   :  { %s47_s1 = inlined_call_operand.vmem [shape: f32[8,128], index: 1, kind: input, shape index: {}]   ;;  %s48_s0 = inlined_call_operand.vmem [shape: f32[8,128], index: 0, kind: input, shape index: {}]   ;;  %s49_s2 = inlined_call_operand.vmem [shape: f32[8,128], index: 2, kind: output, shape index: {}]  }
   0x1   :  { %v12_v0 = vld [vmem:[%s47_s1] sm:$0xff] }
   0x2   :  { %21 = vtanh.f32 %v12_v0  ;;  %v11_v2 = vld [vmem:[%s48_s0] sm:$0xff] }
   0x8   :  { %v22_v1 = vpop.eup %21 }
   0x9   :  { %v14_v3 = vmul.f32 0.25, %v22_v1 }
   0xb   :  { %v15_v4 = vadd.f32 %v14_v3, %v11_v2 }
   0xd   :  { %16 = vst [vmem:[%s49_s2] sm:$0xff] %v15_v4 }

</bundles_post_ra>
